<compile_context>
chip_gen: v5e
topology: v5e:2x2
jax: 0.10.0
libtpu: 0.0.40
codegen_flags: <defaults>
</compile_context>

<pallas_src>
import math
import functools

import numpy as np
import jax
import jax.numpy as jnp
from jax.experimental import pallas as pl
from jax.experimental.pallas import tpu as pltpu


# --------------------------------------------------------------------------
# Helpers
# --------------------------------------------------------------------------
def _tile(dim, preferred, granularity):
    """Largest tile <= preferred that divides `dim` and is a multiple of
    `granularity`, else the full dim (full dims are always legal blocks)."""
    if dim <= preferred:
        return dim
    t = (preferred // granularity) * granularity
    while t >= granularity:
        if dim % t == 0:
            return t
        t -= granularity
    return dim


def _rotate_lanes(x, half):
    """roll-by-half along the last (lane) axis.  The rotate_half sign is folded
    into the *sin* operand by the caller, so this returns [x2, x1] unsigned."""
    if x.shape[-1] % 128 == 0:
        # Production Mixtral head_dim=128: XLU roll slot (nearly free).
        return pltpu.roll(x, shift=half, axis=x.ndim - 1)
    # TODO(synk): small head_dim (<128 lanes, unit-test harness) falls back to
    # slice+concat; real configs take the roll path above.
    return jnp.concatenate([x[..., half:], x[..., :half]], axis=-1)


# --------------------------------------------------------------------------
# Tiled linear kernel: out = x @ W   (W already stored as (K, N))
# --------------------------------------------------------------------------
def _linear_kernel(x_ref, w_ref, o_ref, acc_ref):
    @pl.when(pl.program_id(2) == 0)
    def _():
        acc_ref[...] = jnp.zeros_like(acc_ref)

    acc_ref[...] += jax.lax.dot_general(
        x_ref[...], w_ref[...],
        dimension_numbers=(((1,), (0,)), ((), ())),
        preferred_element_type=jnp.float32,
    )

    @pl.when(pl.program_id(2) == pl.num_programs(2) - 1)
    def _():
        o_ref[...] = acc_ref[...].astype(o_ref.dtype)


def linear(x2d, w_kn, *, out_dtype, tm_pref=512, tn_pref=512, tk_pref=512):
    """x2d: (M, K), w_kn: (K, N) pre-transposed weight.  Returns (M, N)."""
    M, K = x2d.shape
    K2, N = w_kn.shape
    assert K == K2
    tm = _tile(M, tm_pref, 8)     # sublane dim
    tn = _tile(N, tn_pref, 128)   # lane dim of output / weight
    tk = _tile(K, tk_pref, 128)   # reduction dim

    x2d = x2d.astype(w_kn.dtype)  # bf16 MXU operands when weights are bf16

    return pl.pallas_call(
        _linear_kernel,
        out_shape=jax.ShapeDtypeStruct((M, N), out_dtype),
        grid_spec=pltpu.PrefetchScalarGridSpec(
            num_scalar_prefetch=0,
            grid=(M // tm, N // tn, K // tk),
            in_specs=[
                pl.BlockSpec((tm, tk), lambda i, j, k: (i, k)),
                pl.BlockSpec((tk, tn), lambda i, j, k: (k, j)),
            ],
            out_specs=pl.BlockSpec((tm, tn), lambda i, j, k: (i, j)),
            scratch_shapes=[pltpu.VMEM((tm, tn), jnp.float32)],
        ),
        compiler_params=pltpu.CompilerParams(
            dimension_semantics=("parallel", "parallel", "arbitrary")),
    )(x2d, w_kn)


# --------------------------------------------------------------------------
# Pre-pass: RoPE(q, k) + split + head-major layout + scale fold (QKV epilogue)
# --------------------------------------------------------------------------
def _rope_split_kernel(qkv_ref, cos_ref, sin_ref, q_ref, k_ref, v_ref, *,
                       num_heads, num_kv_heads, head_dim, scale):
    D = head_dim
    half = D // 2
    nq = num_heads * D
    nkv = num_kv_heads * D

    cos = cos_ref[0].astype(jnp.float32)    # (tr, D)
    sin = sin_ref[0].astype(jnp.float32)    # pre-signed sin (rotate_half sign folded)

    # Per-head static lane slices of the fused projection output; RoPE in fp32;
    # outputs written directly in (heads, tr, D) head-major layout.
    for h in range(num_heads):
        qh = qkv_ref[0, :, h * D:(h + 1) * D].astype(jnp.float32)
        qh = qh * cos + _rotate_lanes(qh, half) * sin
        q_ref[0, h] = (qh * scale).astype(q_ref.dtype)

    for h in range(num_kv_heads):
        kh = qkv_ref[0, :, nq + h * D: nq + (h + 1) * D].astype(jnp.float32)
        kh = kh * cos + _rotate_lanes(kh, half) * sin
        k_ref[0, h] = kh.astype(k_ref.dtype)
        v_ref[0, h] = qkv_ref[0, :, nq + nkv + h * D:
                              nq + nkv + (h + 1) * D].astype(v_ref.dtype)


def rope_split(qkv, cos, sin_signed, *, num_heads, num_kv_heads, head_dim,
               scale, out_dtype):
    """qkv: (B, S, nq+2*nkv); cos/sin_signed: (B, S, D).
    Returns q:(B,nH,S,D), k:(B,nKV,S,D), v:(B,nKV,S,D) in out_dtype."""
    B, S, W = qkv.shape
    D = head_dim
    tr = _tile(S, 256, 8)

    kernel = functools.partial(
        _rope_split_kernel, num_heads=num_heads, num_kv_heads=num_kv_heads,
        head_dim=head_dim, scale=scale)

    return pl.pallas_call(
        kernel,
        out_shape=(
            jax.ShapeDtypeStruct((B, num_heads, S, D), out_dtype),
            jax.ShapeDtypeStruct((B, num_kv_heads, S, D), out_dtype),
            jax.ShapeDtypeStruct((B, num_kv_heads, S, D), out_dtype),
        ),
        grid_spec=pltpu.PrefetchScalarGridSpec(
            num_scalar_prefetch=0,
            grid=(B, S // tr),
            in_specs=[
                pl.BlockSpec((1, tr, W), lambda b, r: (b, r, 0)),
                pl.BlockSpec((1, tr, D), lambda b, r: (b, r, 0)),
                pl.BlockSpec((1, tr, D), lambda b, r: (b, r, 0)),
            ],
            out_specs=(
                pl.BlockSpec((1, num_heads, tr, D), lambda b, r: (b, 0, r, 0)),
                pl.BlockSpec((1, num_kv_heads, tr, D), lambda b, r: (b, 0, r, 0)),
                pl.BlockSpec((1, num_kv_heads, tr, D), lambda b, r: (b, 0, r, 0)),
            ),
        ),
        compiler_params=pltpu.CompilerParams(
            dimension_semantics=("parallel", "parallel")),
    )(qkv, cos, sin_signed)


# --------------------------------------------------------------------------
# Flash-attention kernel: online softmax, GQA-group packed q block, no RoPE
# --------------------------------------------------------------------------
def _flash_kernel(q_ref, k_ref, v_ref, o_ref, m_sc, l_sc, acc_sc, *,
                  bf16_exp, compute_dtype):
    qi = pl.program_id(2)
    ki = pl.program_id(3)

    g, tq, D = q_ref.shape[1], q_ref.shape[2], q_ref.shape[3]
    tk = k_ref.shape[2]

    @pl.when(ki == 0)
    def _init():
        m_sc[...] = jnp.full_like(m_sc, -jnp.inf)
        l_sc[...] = jnp.zeros_like(l_sc)
        acc_sc[...] = jnp.zeros_like(acc_sc)

    q_start = qi * tq
    q_last = q_start + (tq - 1)
    k_start = ki * tk
    k_last = k_start + (tk - 1)

    def _step(apply_mask):
        # q is already RoPE'd and scale-folded by the pre-pass.
        s = jax.lax.dot_general(
            q_ref[0].reshape(g * tq, D), k_ref[0, 0],
            dimension_numbers=(((1,), (1,)), ((), ())),
            preferred_element_type=jnp.float32,
        ).reshape(g, tq, tk)                           # fp32 scores

        if apply_mask:
            # Causal mask generated in-kernel, only on diagonal-straddling tiles.
            row = q_start + jax.lax.broadcasted_iota(jnp.int32, s.shape, 1)
            col = k_start + jax.lax.broadcasted_iota(jnp.int32, s.shape, 2)
            s = jnp.where(col <= row, s, -1e9)

        m_prev = m_sc[...]
        m_new = jnp.maximum(m_prev, jnp.max(s, axis=-1, keepdims=True))
        alpha = jnp.exp(m_prev - m_new)                # fp32 (tiny count)
        e = s - m_new
        if bf16_exp:
            e = e.astype(jnp.bfloat16)                 # bf16 EUP on v6e/v7x
        p = jnp.exp(e)
        l_sc[...] = alpha * l_sc[...] + jnp.sum(
            p.astype(jnp.float32), axis=-1, keepdims=True)

        pv = jax.lax.dot_general(
            p.reshape(g * tq, tk).astype(compute_dtype), v_ref[0, 0],
            dimension_numbers=(((1,), (0,)), ((), ())),
            preferred_element_type=jnp.float32,
        ).reshape(g, tq, D)

        acc_sc[...] = alpha * acc_sc[...] + pv
        m_sc[...] = m_new

    # Fully visible interior tile: no masking work.
    @pl.when(k_last <= q_start)
    def _():
        _step(False)

    # Diagonal-straddling tile: apply the causal mask.
    @pl.when(jnp.logical_and(k_last > q_start, k_start <= q_last))
    def _():
        _step(True)
    # (fully-future kv tiles run neither branch: compute skipped)

    @pl.when(ki == pl.num_programs(3) - 1)
    def _finalize():
        l = l_sc[...]
        inv = pl.reciprocal(l, approx=True)            # EUP slot
        inv = inv * (2.0 - l * inv)                    # one Newton step (epilogue-only)
        o_ref[0] = (acc_sc[...] * inv).astype(o_ref.dtype)


def flash_attention(q, k, v, *, compute_dtype):
    """q: (B, nH, S, D); k/v: (B, nKV, S, D) — all already RoPE'd / scaled."""
    B, nH, S, D = q.shape
    nKV = k.shape[1]
    g = nH // nKV

    tq = _tile(S, 256, 128)
    tk = _tile(S, 512, 128)   # fatter KV tiles: fewer steps / acc rescales

    bf16_exp = np.dtype(compute_dtype) == np.dtype(jnp.bfloat16)
    kernel = functools.partial(_flash_kernel, bf16_exp=bf16_exp,
                               compute_dtype=compute_dtype)

    return pl.pallas_call(
        kernel,
        out_shape=jax.ShapeDtypeStruct((B, nH, S, D), compute_dtype),
        grid_spec=pltpu.PrefetchScalarGridSpec(
            num_scalar_prefetch=0,
            grid=(B, nKV, S // tq, S // tk),
            in_specs=[
                # the g query heads of kv-group h packed into one block
                pl.BlockSpec((1, g, tq, D), lambda b, h, qi, ki: (b, h, qi, 0)),
                pl.BlockSpec((1, 1, tk, D), lambda b, h, qi, ki: (b, h, ki, 0)),
                pl.BlockSpec((1, 1, tk, D), lambda b, h, qi, ki: (b, h, ki, 0)),
            ],
            out_specs=pl.BlockSpec((1, g, tq, D), lambda b, h, qi, ki: (b, h, qi, 0)),
            scratch_shapes=[
                pltpu.VMEM((g, tq, 1), jnp.float32),   # running max
                pltpu.VMEM((g, tq, 1), jnp.float32),   # running denom
                pltpu.VMEM((g, tq, D), jnp.float32),   # output accumulator
            ],
        ),
        compiler_params=pltpu.CompilerParams(
            dimension_semantics=("parallel", "parallel", "parallel", "arbitrary")),
    )(q, k, v)


# --------------------------------------------------------------------------
# Output projection consuming the (B, nH, S, D) attention layout directly
# --------------------------------------------------------------------------
def _oproj_kernel(a_ref, w_ref, o_ref, acc_ref):
    @pl.when(pl.program_id(2) == 0)
    def _():
        acc_ref[...] = jnp.zeros_like(acc_ref)

    acc_ref[...] += jax.lax.dot_general(
        a_ref[0, 0], w_ref[...],
        dimension_numbers=(((1,), (0,)), ((), ())),
        preferred_element_type=jnp.float32,
    )

    @pl.when(pl.program_id(2) == pl.num_programs(2) - 1)
    def _():
        o_ref[...] = acc_ref[...].astype(o_ref.dtype)


def o_projection(attn, wo_kn, *, out_dtype, tm_pref=256, tn_pref=512):
    """attn: (B, nH, S, D); wo_kn: (nH*D, hidden).  The head axis is folded into
    the reduction grid axis (tk = D per step) so no activation transpose is
    required.  Returns (B*S, hidden)."""
    B, nH, S, D = attn.shape
    K, N = wo_kn.shape
    assert K == nH * D
    M = B * S
    tm = _tile(S, tm_pref, 8)    # must divide S so row tiles never cross batches
    tn = _tile(N, tn_pref, 128)
    st = S // tm

    attn = attn.astype(wo_kn.dtype)

    return pl.pallas_call(
        _oproj_kernel,
        out_shape=jax.ShapeDtypeStruct((M, N), out_dtype),
        grid_spec=pltpu.PrefetchScalarGridSpec(
            num_scalar_prefetch=0,
            grid=(M // tm, N // tn, nH),
            in_specs=[
                pl.BlockSpec((1, 1, tm, D),
                             lambda i, j, h: (i // st, h, i % st, 0)),
                pl.BlockSpec((D, tn), lambda i, j, h: (h, j)),
            ],
            out_specs=pl.BlockSpec((tm, tn), lambda i, j, h: (i, j)),
            scratch_shapes=[pltpu.VMEM((tm, tn), jnp.float32)],
        ),
        compiler_params=pltpu.CompilerParams(
            dimension_semantics=("parallel", "parallel", "arbitrary")),
    )(attn, wo_kn)


# --------------------------------------------------------------------------
# One-time weight preprocessing (NOT per forward step)
# --------------------------------------------------------------------------
def prepare_weights(wq, wk, wv, wo, *, compute_dtype):
    """Concatenate q/k/v weights and transpose everything to (in, out) = (K, N)
    so the matmul kernels consume the MXU-natural layout with no per-call
    concat / transpose / re-materialization."""
    w_qkv_t = jnp.concatenate([wq, wk, wv], axis=0).T.astype(compute_dtype)
    wo_t = wo.T.astype(compute_dtype)
    return {"w_qkv_t": w_qkv_t, "wo_t": wo_t}


# --------------------------------------------------------------------------
# Full MixtralAttention forward
# --------------------------------------------------------------------------
def mixtral_attention(x, params, position_ids, *, num_heads, num_kv_heads,
                      rope_theta, compute_dtype=None):
    B, S, hidden = x.shape
    D = hidden // num_heads
    half = D // 2
    compute_dtype = compute_dtype if compute_dtype is not None else x.dtype

    # --- fused QKV projection (one kernel, one read of x) ---
    x2d = x.reshape(B * S, hidden)
    qkv = linear(x2d, params["w_qkv_t"], out_dtype=compute_dtype)
    qkv = qkv.reshape(B, S, qkv.shape[-1])

    # --- MixtralRotaryEmbedding cache + gather by position_ids (tiny, plain JAX) ---
    inv_freq = 1.0 / (
        rope_theta ** (jnp.arange(0, D, 2, dtype=jnp.float32) / D))
    t = jnp.arange(S, dtype=jnp.float32)
    freqs = jnp.outer(t, inv_freq)
    emb = jnp.concatenate([freqs, freqs], axis=-1)       # (S, D)
    cos = jnp.cos(emb)[position_ids]                      # (B, S, D)
    sin = jnp.sin(emb)[position_ids]
    # Fold the rotate_half sign into sin so the kernels only need a lane roll:
    #   rotate_half(x) * sin == roll(x, D/2) * sin_signed
    sign = jnp.concatenate([-jnp.ones((half,), jnp.float32),
                            jnp.ones((half,), jnp.float32)])
    sin_signed = sin * sign

    # --- pre-pass: RoPE + head-major split + softmax scale fold into q ---
    scale = 1.0 / math.sqrt(D)
    q, k, v = rope_split(qkv, cos, sin_signed, num_heads=num_heads,
                         num_kv_heads=num_kv_heads, head_dim=D, scale=scale,
                         out_dtype=compute_dtype)

    # --- flash attention (causal, GQA) ---
    attn = flash_attention(q, k, v, compute_dtype=compute_dtype)   # (B, nH, S, D)

    # --- output projection (consumes (B, nH, S, D) directly, no transpose) ---
    out = o_projection(attn, params["wo_t"], out_dtype=x.dtype)
    return out.reshape(B, S, hidden)


# --------------------------------------------------------------------------
# Pure-JAX reference (mirrors the PyTorch forward) for a correctness check
# --------------------------------------------------------------------------
def reference(x, wq, wk, wv, wo, position_ids, *, num_heads, num_kv_heads, rope_theta):
    B, S, hidden = x.shape
    head_dim = hidden // num_heads
    g = num_heads // num_kv_heads

    q = (x @ wq.T).reshape(B, S, num_heads, head_dim).transpose(0, 2, 1, 3)
    k = (x @ wk.T).reshape(B, S, num_kv_heads, head_dim).transpose(0, 2, 1, 3)
    v = (x @ wv.T).reshape(B, S, num_kv_heads, head_dim).transpose(0, 2, 1, 3)

    inv_freq = 1.0 / (
        rope_theta ** (jnp.arange(0, head_dim, 2, dtype=jnp.float32) / head_dim))
    freqs = jnp.outer(jnp.arange(S, dtype=jnp.float32), inv_freq)
    emb = jnp.concatenate([freqs, freqs], axis=-1)
    cos = jnp.cos(emb)[position_ids][:, None]   # (B,1,S,D)
    sin = jnp.sin(emb)[position_ids][:, None]

    def rot(xh):
        x1, x2 = xh[..., :head_dim // 2], xh[..., head_dim // 2:]
        return jnp.concatenate([-x2, x1], axis=-1)

    q = q * cos + rot(q) * sin
    k = k * cos + rot(k) * sin

    k = jnp.repeat(k, g, axis=1)
    v = jnp.repeat(v, g, axis=1)

    causal = jnp.tril(jnp.ones((S, S), dtype=bool))
    mask = jnp.where(causal, 0.0, -1e9)[None, None]
    scores = jnp.einsum("bhqd,bhkd->bhqk", q, k) / math.sqrt(head_dim) + mask
    p = jax.nn.softmax(scores, axis=-1)
    o = jnp.einsum("bhqk,bhkd->bhqd", p, v)
    o = o.transpose(0, 2, 1, 3).reshape(B, S, hidden)
    return o @ wo.T


if __name__ == "__main__":
    # Small config consistent with the module: hidden=32, 4 query heads, 2 kv heads
    B, S, hidden = 2, 8, 32
    num_heads, num_kv_heads = 4, 2
    head_dim = hidden // num_heads  # 8
    rope_theta = 10000.0

    key = jax.random.PRNGKey(0)
    k1, k2, k3, k4, k5 = jax.random.split(key, 5)
    x = jax.random.normal(k1, (B, S, hidden), jnp.float32)
    # nn.Linear weight shapes: (out_features, in_features)
    wq = jax.random.normal(k2, (num_heads * head_dim, hidden), jnp.float32) * 0.05
    wk = jax.random.normal(k3, (num_kv_heads * head_dim, hidden), jnp.float32) * 0.05
    wv = jax.random.normal(k4, (num_kv_heads * head_dim, hidden), jnp.float32) * 0.05
    wo = jax.random.normal(k5, (hidden, num_heads * head_dim), jnp.float32) * 0.05
    position_ids = jnp.broadcast_to(jnp.arange(S, dtype=jnp.int32), (B, S))

    ref = reference(
        x, wq, wk, wv, wo, position_ids,
        num_heads=num_heads, num_kv_heads=num_kv_heads, rope_theta=rope_theta,
    )

    # fp32 compute path (tight-ish tolerance; approx reciprocal + Newton step)
    params_f32 = prepare_weights(wq, wk, wv, wo, compute_dtype=jnp.float32)
    out = mixtral_attention(
        x, params_f32, position_ids,
        num_heads=num_heads, num_kv_heads=num_kv_heads, rope_theta=rope_theta,
    )
    out = jax.block_until_ready(out)
    assert out.shape == (B, S, hidden)
    assert jnp.allclose(out, ref, atol=1e-3, rtol=1e-3), float(
        jnp.max(jnp.abs(out - ref)))

    # bf16 MXU-operand path (fp32 accumulation, fp32 softmax stats, bf16 exp)
    params_bf16 = prepare_weights(wq, wk, wv, wo, compute_dtype=jnp.bfloat16)
    out_bf16 = mixtral_attention(
        x, params_bf16, position_ids,
        num_heads=num_heads, num_kv_heads=num_kv_heads, rope_theta=rope_theta,
        compute_dtype=jnp.bfloat16,
    )
    out_bf16 = jax.block_until_ready(out_bf16)
    assert jnp.allclose(out_bf16, ref, atol=5e-2, rtol=5e-2), float(
        jnp.max(jnp.abs(out_bf16 - ref)))

    print("KERNEL_OK")
</pallas_src>

<mosaic_0001>
module attributes {stable_mosaic.version = 11 : i64} {
  func.func @_linear_kernel(%arg0: i32, %arg1: i32, %arg2: i32, %arg3: memref<16x32xf32, #tpu.memory_space<vmem>>, %arg4: memref<32x64xf32, #tpu.memory_space<vmem>>, %arg5: memref<16x64xf32, #tpu.memory_space<vmem>>, %arg6: memref<16x64xf32, #tpu.memory_space<vmem>>) attributes {dimension_semantics = [#tpu.dimension_semantics<parallel>, #tpu.dimension_semantics<parallel>, #tpu.dimension_semantics<arbitrary>], iteration_bounds = array<i64: 1, 1, 1>, scalar_prefetch = 0 : i64, scratch_operands = 1 : i64, tpu.core_type = #tpu.core_type<tc>, window_params = [{transform_indices = @transform_0, window_bounds = array<i64: 16, 32>}, {transform_indices = @transform_1, window_bounds = array<i64: 32, 64>}, {transform_indices = @transform_2, window_bounds = array<i64: 16, 64>}]} {
    %c0_i32 = arith.constant 0 : i32
    %0 = arith.cmpi eq, %arg2, %c0_i32 : i32
    %1 = arith.extui %0 : i1 to i32
    %c0_i32_0 = arith.constant 0 : i32
    %2 = arith.cmpi ne, %1, %c0_i32_0 : i32
    scf.if %2 {
      %cst_10 = arith.constant 0.000000e+00 : f32
      %12 = vector.broadcast %cst_10 : f32 to vector<16x64xf32>
      %c0_11 = arith.constant 0 : index
      %c0_12 = arith.constant 0 : index
      %13 = vector.load %arg6[%c0_11, %c0_12] : memref<16x64xf32, #tpu.memory_space<vmem>>, vector<16x64xf32>
      tpu.vector_store %arg6[%c0_11, %c0_12], %12 {strides = array<i32>} : memref<16x64xf32, #tpu.memory_space<vmem>>, vector<16x64xf32>,
    } else {
    }
    %c0 = arith.constant 0 : index
    %c0_1 = arith.constant 0 : index
    %3 = vector.load %arg6[%c0, %c0_1] : memref<16x64xf32, #tpu.memory_space<vmem>>, vector<16x64xf32>
    %c0_2 = arith.constant 0 : index
    %c0_3 = arith.constant 0 : index
    %4 = vector.load %arg3[%c0_2, %c0_3] : memref<16x32xf32, #tpu.memory_space<vmem>>, vector<16x32xf32>
    %c0_4 = arith.constant 0 : index
    %c0_5 = arith.constant 0 : index
    %5 = vector.load %arg4[%c0_4, %c0_5] : memref<32x64xf32, #tpu.memory_space<vmem>>, vector<32x64xf32>
    %cst = arith.constant dense<0.000000e+00> : vector<16x64xf32>
    %6 = tpu.matmul %4, %5, %cst {dimension_numbers = #tpu.dot_dimension_numbers<[1], [0], [0], [1], [0, 0, 1, 1], [], []>} : vector<16x32xf32>, vector<32x64xf32>, vector<16x64xf32> -> vector<16x64xf32>
    %7 = arith.addf %3, %6 : vector<16x64xf32>
    %c0_6 = arith.constant 0 : index
    %c0_7 = arith.constant 0 : index
    %8 = vector.load %arg6[%c0_6, %c0_7] : memref<16x64xf32, #tpu.memory_space<vmem>>, vector<16x64xf32>
    tpu.vector_store %arg6[%c0_6, %c0_7], %7 {strides = array<i32>} : memref<16x64xf32, #tpu.memory_space<vmem>>, vector<16x64xf32>,
    %c0_i32_8 = arith.constant 0 : i32
    %9 = arith.cmpi eq, %arg2, %c0_i32_8 : i32
    %10 = arith.extui %9 : i1 to i32
    %c0_i32_9 = arith.constant 0 : i32
    %11 = arith.cmpi ne, %10, %c0_i32_9 : i32
    scf.if %11 {
      %c0_10 = arith.constant 0 : index
      %c0_11 = arith.constant 0 : index
      %12 = vector.load %arg6[%c0_10, %c0_11] : memref<16x64xf32, #tpu.memory_space<vmem>>, vector<16x64xf32>
      %c0_12 = arith.constant 0 : index
      %c0_13 = arith.constant 0 : index
      %13 = vector.load %arg5[%c0_12, %c0_13] : memref<16x64xf32, #tpu.memory_space<vmem>>, vector<16x64xf32>
      tpu.vector_store %arg5[%c0_12, %c0_13], %12 {strides = array<i32>} : memref<16x64xf32, #tpu.memory_space<vmem>>, vector<16x64xf32>,
    } else {
    }
    return
  }
  func.func @transform_0(%arg0: i32, %arg1: i32, %arg2: i32) -> (i32, i32) {
    %c0_i32 = arith.constant 0 : i32
    return %arg0, %arg2 : i32, i32
  }
  func.func @transform_1(%arg0: i32, %arg1: i32, %arg2: i32) -> (i32, i32) {
    %c0_i32 = arith.constant 0 : i32
    return %arg2, %arg1 : i32, i32
  }
  func.func @transform_2(%arg0: i32, %arg1: i32, %arg2: i32) -> (i32, i32) {
    %c0_i32 = arith.constant 0 : i32
    return %arg0, %arg1 : i32, i32
  }
}

</mosaic_0001>

<bundles_post_ra>
// kernel: tpu_custom_call.1
= control target key start
LH: loop header
LB: loop body
LE: loop exit
PB: predicated region body
PF: predicated region fallthrough
CT: control target
= control target key end

     0   :  { %7 = vsyncpa [#allocation4], 0  ;;  %s256_s0 = inlined_call_operand.hbm [shape: f32[16,32], index: 0, kind: input, shape index: {}]   ;;  %s257_s1 = inlined_call_operand.hbm [shape: f32[32,64], index: 1, kind: input, shape index: {}]   ;;  %s258_s2 = inlined_call_operand.hbm [shape: f32[16,64], index: 2, kind: output, shape index: {}]  }
   0x1   :  { %8 = vsyncpa [#allocation7], 0 }
   0x2   :  { %9 = vsyncpa [#allocation5], 0  ;;  %s14_s11 = sshll.u32 %s256_s0, 4  ;;  %s211_s12 = smov [#allocation3]   ;;  %s15_s11 = int_to_ptr.hbm [resolvable:$true] %s14_s11 }
   0x3   :  { %s16_s13 = sshll.u32 %s211_s12, 4  ;;  %s27_s16 = sshll.u32 %s257_s1, 4  ;;  %s17_s13 = int_to_ptr.vmem [resolvable:$true] %s16_s13  ;;  %s28_s16 = int_to_ptr.hbm [resolvable:$true] %s27_s16 }
   0x4   :  { %s212_s17 = smov 128   ;;  %s213_s18 = smov 8  }
   0x5   :  { %22 = dma.hbm_to_vmem [thread:$0]  %s15_s11, 256, %s17_s13, [#allocation4], %s212_s17, %s212_s17, %s213_s18  }
   0x6   :  { %s214_s19 = smov [#allocation6]  }
   0x7   :  { %s29_s20 = sshll.u32 %s214_s19, 4  ;;  %s30_s20 = int_to_ptr.vmem [resolvable:$true] %s29_s20 }
   0x8   :  { %35 = dma.hbm_to_vmem [thread:$0]  %s28_s16, 512, %s30_s20, [#allocation7], %s212_s17, %s212_s17, %s213_s18  }
   0x9   :  { %205 = dma.done.wait [#allocation4], 256  }
   0xa   :  { %206 = vsyncadd [#allocation4], 4294967040 }
   0xb   :  { %207 = dma.done.wait [#allocation7], 512  }
   0xc   :  { %208 = vsyncadd [#allocation7], 4294966784  ;;  %vm48_vm0 = vcmask 523264   ;;  %v215_v0 = vmov 0.0   ;;  %v58_v1 = vld [vmem:[#allocation6 + $0x18] sm:$0xff]  ;;  %v57_v2 = vld [vmem:[#allocation6 + $0x10] sm:$0xff] }
   0xd   :  { %49 = vst.msk [vmem:[#allocation2] sm:$0xff] %vm48_vm0, %v215_v0  ;;  %78 = vmatpush.msra.mxu0 %v58_v1  ;;  %123 = vmatpush.msra.mxu1 %v58_v1  ;;  %v56_v3 = vld [vmem:[#allocation6 + $0x8] sm:$0xff]  ;;  %v55_v4 = vld [vmem:[#allocation6] sm:$0xff]  ;;  %v53_v5 = vld [vmem:[#allocation3] sm:$0xff]  ;;  %vm59_vm1 = vcmask 261120   ;;  %s216_s0 = smov [#allocation8]  }
   0xe   :  { %50 = vst.msk [vmem:[#allocation2 + $0x8] sm:$0xff] %vm48_vm0, %v215_v0  ;;  %v54_v6 = vld [vmem:[#allocation3 + $0x8] sm:$0xff]  ;;  %s105_s1 = sshll.u32 %s216_s0, 4  ;;  %s107_s23 = sshll.u32 %s258_s2, 4  ;;  %s106_s1 = int_to_ptr.vmem [resolvable:$true] %s105_s1  ;;  %s108_s23 = int_to_ptr.hbm [resolvable:$true] %s107_s23 }
   0xf   :  { %79 = vmatpush.msra.mxu0 %v57_v2  ;;  %124 = vmatpush.msra.mxu1 %v57_v2 }
  0x11   :  { %80 = vmatpush.msra.mxu0 %v56_v3  ;;  %125 = vmatpush.msra.mxu1 %v56_v3 }
  0x13   :  { %81 = vmatpush.msra.mxu0 %v55_v4  ;;  %126 = vmatpush.msra.mxu1 %v55_v4 }
  0x14   :  { %121 = vmatmul.msk.f32.vlgmr.msra.gmra.mxu0 %vm59_vm1, %v53_v5  ;;  %122 = vmatmul.msk.f32.vlgmr.msra.gmra.mxu1 %vm59_vm1, %v54_v6  ;;  %v51_v7 = vld [vmem:[#allocation2] sm:$0xff] }
  0x15   :  { %v52_v8 = vld [vmem:[#allocation2 + $0x8] sm:$0xff] }
  0x91   :  { %v83_v9 = vpop.f32.mrf.mxu0  ;;  %v86_v10 = vpop.f32.mrf.mxu1 }
  0x92   :  { %v89_v11 = vadd.f32 %v83_v9, %v51_v7  ;;  %v90_v12 = vadd.f32 %v86_v10, %v52_v8 }
  0x94   :  { %92 = vst.msk [vmem:[#allocation2] sm:$0xff] %vm48_vm0, %v89_v11 }
  0x95   :  { %93 = vst.msk [vmem:[#allocation2 + $0x8] sm:$0xff] %vm48_vm0, %v90_v12 }
  0x9b   :  { %v97_v13 = vld [vmem:[#allocation2] sm:$0xff] }
  0x9c   :  { %v98_v14 = vld [vmem:[#allocation2 + $0x8] sm:$0xff]  ;;  %99 = vst.msk [vmem:[#allocation8] sm:$0xff] %vm48_vm0, %v97_v13 }
  0x9d   :  { %100 = vst.msk [vmem:[#allocation8 + $0x8] sm:$0xff] %vm48_vm0, %v98_v14 }
  0x9e   :  { %113 = dma.vmem_to_hbm [thread:$0]  %s106_s1, 256, %s108_s23, [#allocation5], %s212_s17, %s212_s17, %s213_s18  }
  0x9f   :  { %209 = dma.done.wait [#allocation5], 256  }
  0xa0   :  { %210 = vsyncadd [#allocation5], 4294967040 }
  0xa1   :  { %118 = vsyncpa [#allocation4], 1 }
  0xa2   :  { %119 = vsyncpa [#allocation7], 1 }
  0xa3   :  { %120 = vsyncpa [#allocation5], 1 }

</bundles_post_ra>
